<compile_context>
chip_gen: v7x
topology: tpu7x:2x2x1
jax: 0.10.0
libtpu: 0.0.40
codegen_flags: <defaults>
</compile_context>

<pallas_src>
import jax
import jax.numpy as jnp
from jax.experimental import pallas as pl
from jax.experimental.pallas import tpu as pltpu

LANE = 128


def _round_up(n, m):
    return ((n + m - 1) // m) * m


# --------------------------------------------------------------------------
# Kernel
# --------------------------------------------------------------------------
def decoder_kernel(x_ref, h0_ref, w_g_ref, b_g_ref, w_fc_ref, b_fc_ref,
                   out_ref, h_out_ref, xh_ref):
    """One GRU step per grid iteration; state carried in VMEM scratch.

    Shapes (all gate/output axes zero-padded to multiples of 128 lanes):
      x:    (1, B, Dp)      w_g:  (Dp+Hp, 4*Hp)  bf16   b_g:  (1, 4*Hp) f32
      h0:   (B, Hp)         w_fc: (Hp, Dp)       bf16   b_fc: (1, Dp)   f32
      out:  (1, B, Dp)      h_out:(B, Hp)
      xh (scratch): (B, Dp+Hp) f32  -- [ x | h ] fused matmul operand; the
        right half doubles as the persistent hidden state across steps.

    w_g column blocks (each Hp wide, lane-aligned):
      [ W_r | W_z | W_in (x rows only) | W_hn (h rows only) ]
    so  g = [x|h] @ w_g + b_g  =  [ r_pre | z_pre | xW_in+b_in | hW_hn+b_hn ].
    """
    t = pl.program_id(0)
    Dp = x_ref.shape[-1]
    Hp = h0_ref.shape[-1]

    # Load the initial hidden state into the right half of the fused operand
    # (first step only; afterwards it is carried there across the grid).
    @pl.when(t == 0)
    def _():
        xh_ref[:, pl.ds(Dp, Hp)] = h0_ref[...]

    # Current-step input into the left half (lane-aligned store).
    xh_ref[:, pl.ds(0, Dp)] = x_ref[0]

    h = xh_ref[:, pl.ds(Dp, Hp)]                       # (B, Hp) f32, pad lanes = 0

    # One fused MXU push for all gate pre-activations (bf16 operands, f32 acc).
    g = jnp.dot(xh_ref[...].astype(jnp.bfloat16), w_g_ref[...],
                preferred_element_type=jnp.float32) + b_g_ref[...]

    # Lane-aligned (whole-vreg) gate extraction; all gate math in f32.
    r = jax.nn.sigmoid(g[:, 0:Hp])
    z = jax.nn.sigmoid(g[:, Hp:2 * Hp])
    n = jnp.tanh(g[:, 2 * Hp:3 * Hp] + r * g[:, 3 * Hp:4 * Hp])
    h_new = (1.0 - z) * n + z * h                      # padded lanes stay exactly 0

    out = jnp.dot(h_new.astype(jnp.bfloat16), w_fc_ref[...],
                  preferred_element_type=jnp.float32) + b_fc_ref[...]
    out_ref[0] = out.astype(out_ref.dtype)

    # Carry state in VMEM; write back to HBM only on the last step.
    xh_ref[:, pl.ds(Dp, Hp)] = h_new

    @pl.when(t == pl.num_programs(0) - 1)
    def _():
        h_out_ref[...] = h_new.astype(h_out_ref.dtype)


# --------------------------------------------------------------------------
# One-time weight repack (wrapper-side)
# --------------------------------------------------------------------------
def prepare_decoder_params(params):
    """Repack PyTorch-layout GRU/Linear params into the fused TPU layout."""
    w_ih, w_hh = params["w_ih"], params["w_hh"]      # (3H, D), (3H, H)
    b_ih, b_hh = params["b_ih"], params["b_hh"]      # (1, 3H), (1, 3H)
    w_fc, b_fc = params["w_fc"], params["b_fc"]      # (D, H),  (1, D)

    three_h, D = w_ih.shape
    H = three_h // 3
    Hp = _round_up(H, LANE)
    Dp = _round_up(D, LANE)

    w_i3 = w_ih.reshape(3, H, D)                     # [W_ir, W_iz, W_in]
    w_h3 = w_hh.reshape(3, H, H)                     # [W_hr, W_hz, W_hn]
    b_i3 = b_ih.reshape(3, H)
    b_h3 = b_hh.reshape(3, H)

    def pad_w(w, in_dim, in_pad):                    # (H, in) -> (in_pad, Hp)
        return jnp.pad(w.T, ((0, in_pad - in_dim), (0, Hp - H)))

    zeros_x = jnp.zeros((Dp, Hp), jnp.float32)
    zeros_h = jnp.zeros((Hp, Hp), jnp.float32)

    # Column blocks: [ r | z | n_i | n_h ]; x-rows on top, h-rows below.
    x_rows = jnp.concatenate([pad_w(w_i3[0], D, Dp), pad_w(w_i3[1], D, Dp),
                              pad_w(w_i3[2], D, Dp), zeros_x], axis=1)   # (Dp, 4Hp)
    h_rows = jnp.concatenate([pad_w(w_h3[0], H, Hp), pad_w(w_h3[1], H, Hp),
                              zeros_h, pad_w(w_h3[2], H, Hp)], axis=1)   # (Hp, 4Hp)
    w_g = jnp.concatenate([x_rows, h_rows], axis=0)                      # (Dp+Hp, 4Hp)

    def pad_b(b):
        return jnp.pad(b, (0, Hp - H))

    # Pre-sum b_ih+b_hh for r and z; keep b_in / b_hn separate (b_hn sits
    # inside r * (...)).
    b_g = jnp.concatenate([pad_b(b_i3[0] + b_h3[0]),
                           pad_b(b_i3[1] + b_h3[1]),
                           pad_b(b_i3[2]),
                           pad_b(b_h3[2])]).reshape(1, 4 * Hp)

    w_fc_p = jnp.pad(w_fc.T, ((0, Hp - H), (0, Dp - D)))                 # (Hp, Dp)
    b_fc_p = jnp.pad(b_fc, ((0, 0), (0, Dp - D)))                        # (1, Dp)

    return {
        "w_g": w_g.astype(jnp.bfloat16),      # bf16 weights: half the DMA, native MXU
        "b_g": b_g.astype(jnp.float32),
        "w_fc": w_fc_p.astype(jnp.bfloat16),
        "b_fc": b_fc_p.astype(jnp.float32),
    }


# --------------------------------------------------------------------------
# pallas_call wrapper (time grid)
# --------------------------------------------------------------------------
def _run_decoder(x_seq_p, h0_p, packed):
    """x_seq_p: (T, B, Dp) f32 ; h0_p: (B, Hp) f32 (both lane-padded)."""
    T, B, Dp = x_seq_p.shape
    Hp = h0_p.shape[-1]

    out_p, h_out_p = pl.pallas_call(
        decoder_kernel,
        out_shape=(
            jax.ShapeDtypeStruct((T, B, Dp), jnp.float32),   # lane-dense outputs
            jax.ShapeDtypeStruct((B, Hp), jnp.float32),
        ),
        grid_spec=pltpu.PrefetchScalarGridSpec(
            num_scalar_prefetch=0,
            grid=(T,),
            in_specs=[
                pl.BlockSpec((1, B, Dp), lambda t: (t, 0, 0)),      # x step t
                pl.BlockSpec((B, Hp), lambda t: (0, 0)),            # h0 (resident)
                pl.BlockSpec((Dp + Hp, 4 * Hp), lambda t: (0, 0)),  # fused gate W
                pl.BlockSpec((1, 4 * Hp), lambda t: (0, 0)),        # fused gate b
                pl.BlockSpec((Hp, Dp), lambda t: (0, 0)),           # fc W
                pl.BlockSpec((1, Dp), lambda t: (0, 0)),            # fc b
            ],
            out_specs=(
                pl.BlockSpec((1, B, Dp), lambda t: (t, 0, 0)),
                pl.BlockSpec((B, Hp), lambda t: (0, 0)),
            ),
            scratch_shapes=[pltpu.VMEM((B, Dp + Hp), jnp.float32)],  # [x | h] state
        ),
        compiler_params=pltpu.CompilerParams(
            dimension_semantics=("arbitrary",)),   # time axis is a carried loop
    )(x_seq_p, h0_p, packed["w_g"], packed["b_g"], packed["w_fc"], packed["b_fc"])
    return out_p, h_out_p


@jax.jit
def decoder_forward(inp, hidden, packed):
    """Module-matching forward. inp: (B, D); hidden: (1, B, H).

    Returns (out: (1, B, D), hidden: (1, B, H)) — exactly the PyTorch Decoder.
    """
    B, D = inp.shape
    H = hidden.shape[-1]
    Hp, Dp = packed["w_fc"].shape

    x_p = jnp.pad(inp, ((0, 0), (0, Dp - D)))[None]            # (1, B, Dp)
    h0_p = jnp.pad(hidden[0], ((0, 0), (0, Hp - H)))           # (B, Hp)

    out_p, h_out_p = _run_decoder(x_p, h0_p, packed)
    return out_p[0, :, :D][None], h_out_p[:, :H][None]


@jax.jit
def decoder_decode(x_seq, hidden, packed):
    """Multi-step (teacher-forced) decode: x_seq: (T, B, D), hidden: (1, B, H).

    Weights and the hidden state stay VMEM-resident across all T steps.
    Returns (outs: (T, B, D), hidden: (1, B, H)).
    """
    # TODO(synk): a fully autoregressive loop (x_{t+1} derived from out_t)
    # would need the argmax/embedding inside the kernel; not part of this module.
    T, B, D = x_seq.shape
    H = hidden.shape[-1]
    Hp, Dp = packed["w_fc"].shape

    x_p = jnp.pad(x_seq, ((0, 0), (0, 0), (0, Dp - D)))        # (T, B, Dp)
    h0_p = jnp.pad(hidden[0], ((0, 0), (0, Hp - H)))           # (B, Hp)

    out_p, h_out_p = _run_decoder(x_p, h0_p, packed)
    return out_p[:, :, :D], h_out_p[:, :H][None]


# --------------------------------------------------------------------------
# Params + references
# --------------------------------------------------------------------------
def init_params(key, output_dim, hid_dim):
    # deterministic uniform init, same bound convention as PyTorch GRU/Linear
    k = jax.random.split(key, 6)
    bound = 1.0 / jnp.sqrt(hid_dim)
    u = lambda kk, shape, b: jax.random.uniform(kk, shape, jnp.float32, -b, b)
    return {
        "w_ih": u(k[0], (3 * hid_dim, output_dim), bound),
        "w_hh": u(k[1], (3 * hid_dim, hid_dim), bound),
        "b_ih": u(k[2], (1, 3 * hid_dim), bound),
        "b_hh": u(k[3], (1, 3 * hid_dim), bound),
        "w_fc": u(k[4], (output_dim, hid_dim), bound),
        "b_fc": u(k[5], (1, output_dim), bound),
    }


def decoder_reference(inp, hidden, p):
    """Pure-JAX fp32 reference mirroring torch.nn.GRU (1 step) + Linear."""
    x = inp.astype(jnp.float32)
    h = hidden[0].astype(jnp.float32)
    H = h.shape[-1]
    gi = x @ p["w_ih"].T + p["b_ih"]
    gh = h @ p["w_hh"].T + p["b_hh"]
    r = jax.nn.sigmoid(gi[:, :H] + gh[:, :H])
    z = jax.nn.sigmoid(gi[:, H:2 * H] + gh[:, H:2 * H])
    n = jnp.tanh(gi[:, 2 * H:] + r * gh[:, 2 * H:])
    h_new = (1 - z) * n + z * h
    out = h_new @ p["w_fc"].T + p["b_fc"]
    return out[None], h_new[None]


def decoder_reference_matched(x_seq, hidden, packed, D, H):
    """Matched-precision reference: bf16 matmul operands, f32 acc + gate math.

    Mirrors the kernel numerics exactly (up to accumulation order), so it is
    compared with a tight tolerance; the fp32 reference is compared loosely.
    """
    Hp, Dp = packed["w_fc"].shape
    hp = jnp.pad(hidden[0].astype(jnp.float32), ((0, 0), (0, Hp - H)))
    outs = []
    for t in range(x_seq.shape[0]):
        xp = jnp.pad(x_seq[t].astype(jnp.float32), ((0, 0), (0, Dp - D)))
        xh = jnp.concatenate([xp, hp], axis=1)
        g = jnp.dot(xh.astype(jnp.bfloat16), packed["w_g"],
                    preferred_element_type=jnp.float32) + packed["b_g"]
        r = jax.nn.sigmoid(g[:, :Hp])
        z = jax.nn.sigmoid(g[:, Hp:2 * Hp])
        n = jnp.tanh(g[:, 2 * Hp:3 * Hp] + r * g[:, 3 * Hp:4 * Hp])
        hp = (1.0 - z) * n + z * hp
        out = jnp.dot(hp.astype(jnp.bfloat16), packed["w_fc"],
                      preferred_element_type=jnp.float32) + packed["b_fc"]
        outs.append(out[:, :D])
    return jnp.stack(outs), hp[:, :H]


# --------------------------------------------------------------------------
# Test
# --------------------------------------------------------------------------
if __name__ == "__main__":
    batch = 8
    output_dim = 16
    hid_dim = 32
    T = 8

    key = jax.random.PRNGKey(0)
    k_in, k_seq, k_hid, k_par = jax.random.split(key, 4)

    inp = jax.random.normal(k_in, (batch, output_dim), jnp.float32)
    x_seq = jax.random.normal(k_seq, (T, batch, output_dim), jnp.float32)
    hidden = jax.random.normal(k_hid, (1, batch, hid_dim), jnp.float32)
    params = init_params(k_par, output_dim, hid_dim)

    packed = prepare_decoder_params(params)      # one-time weight repack

    # ---- single step (matches the PyTorch module's forward) ----
    out, h_new = decoder_forward(inp, hidden, packed)
    out = jax.block_until_ready(out)
    h_new = jax.block_until_ready(h_new)
    assert out.shape == (1, batch, output_dim)
    assert h_new.shape == (1, batch, hid_dim)

    ref_out, ref_h = decoder_reference(inp, hidden, params)
    # bf16-weight path: loosened tolerance vs the fp32 reference.
    assert jnp.allclose(out, ref_out, atol=5e-2, rtol=5e-2)
    assert jnp.allclose(h_new, ref_h, atol=5e-2, rtol=5e-2)

    # Tight check against the matched-precision reference (same numerics).
    m_out, m_h = decoder_reference_matched(inp[None], hidden, packed,
                                           output_dim, hid_dim)
    assert jnp.allclose(out[0], m_out[0], atol=2e-3, rtol=2e-3)
    assert jnp.allclose(h_new[0], m_h, atol=2e-3, rtol=2e-3)

    # ---- multi-step decode (time grid; weights + state stay resident) ----
    outs, h_T = decoder_decode(x_seq, hidden, packed)
    outs = jax.block_until_ready(outs)
    h_T = jax.block_until_ready(h_T)
    assert outs.shape == (T, batch, output_dim)
    assert h_T.shape == (1, batch, hid_dim)

    r_h = hidden
    r_outs = []
    for t in range(T):
        r_o, r_h = decoder_reference(x_seq[t], r_h, params)
        r_outs.append(r_o[0])
    r_outs = jnp.stack(r_outs)
    assert jnp.allclose(outs, r_outs, atol=5e-2, rtol=5e-2)
    assert jnp.allclose(h_T, r_h, atol=5e-2, rtol=5e-2)

    m_outs, m_hT = decoder_reference_matched(x_seq, hidden, packed,
                                             output_dim, hid_dim)
    assert jnp.allclose(outs, m_outs, atol=2e-3, rtol=2e-3)
    assert jnp.allclose(h_T[0], m_hT, atol=2e-3, rtol=2e-3)

    print("KERNEL_OK")
</pallas_src>

<mosaic_0001>
module attributes {stable_mosaic.version = 11 : i64} {
  func.func @decoder_kernel(%arg0: i32, %arg1: memref<1x8x128xf32, #tpu.memory_space<vmem>>, %arg2: memref<8x128xf32, #tpu.memory_space<vmem>>, %arg3: memref<256x512xbf16, #tpu.memory_space<vmem>>, %arg4: memref<1x512xf32, #tpu.memory_space<vmem>>, %arg5: memref<128x128xbf16, #tpu.memory_space<vmem>>, %arg6: memref<1x128xf32, #tpu.memory_space<vmem>>, %arg7: memref<1x8x128xf32, #tpu.memory_space<vmem>>, %arg8: memref<8x128xf32, #tpu.memory_space<vmem>>, %arg9: memref<8x256xf32, #tpu.memory_space<vmem>>) attributes {dimension_semantics = [#tpu.dimension_semantics<arbitrary>], iteration_bounds = array<i64: 1>, scalar_prefetch = 0 : i64, scratch_operands = 1 : i64, tpu.core_type = #tpu.core_type<tc>, window_params = [{transform_indices = @transform_0, window_bounds = array<i64: 1, 8, 128>}, {pipeline_mode = #tpu.pipeline_mode<synchronous>, transform_indices = @transform_1, window_bounds = array<i64: 8, 128>}, {pipeline_mode = #tpu.pipeline_mode<synchronous>, transform_indices = @transform_2, window_bounds = array<i64: 256, 512>}, {pipeline_mode = #tpu.pipeline_mode<synchronous>, transform_indices = @transform_3, window_bounds = array<i64: 1, 512>}, {pipeline_mode = #tpu.pipeline_mode<synchronous>, transform_indices = @transform_4, window_bounds = array<i64: 128, 128>}, {pipeline_mode = #tpu.pipeline_mode<synchronous>, transform_indices = @transform_5, window_bounds = array<i64: 1, 128>}, {transform_indices = @transform_6, window_bounds = array<i64: 1, 8, 128>}, {pipeline_mode = #tpu.pipeline_mode<synchronous>, transform_indices = @transform_7, window_bounds = array<i64: 8, 128>}]} {
    %c0_i32 = arith.constant 0 : i32
    %0 = arith.cmpi eq, %arg0, %c0_i32 : i32
    %1 = arith.extui %0 : i1 to i32
    %c0_i32_0 = arith.constant 0 : i32
    %2 = arith.cmpi ne, %1, %c0_i32_0 : i32
    scf.if %2 {
      %c0_27 = arith.constant 0 : index
      %c0_28 = arith.constant 0 : index
      %49 = vector.load %arg2[%c0_27, %c0_28] : memref<8x128xf32, #tpu.memory_space<vmem>>, vector<8x128xf32>
      %c0_29 = arith.constant 0 : index
      %c128_30 = arith.constant 128 : index
      %50 = vector.load %arg9[%c0_29, %c128_30] : memref<8x256xf32, #tpu.memory_space<vmem>>, vector<8x128xf32>
      tpu.vector_store %arg9[%c0_29, %c128_30], %49 {strides = array<i32>} : memref<8x256xf32, #tpu.memory_space<vmem>>, vector<8x128xf32>,
    } else {
    }
    %c0 = arith.constant 0 : index
    %c0_1 = arith.constant 0 : index
    %c0_2 = arith.constant 0 : index
    %3 = vector.load %arg1[%c0, %c0_1, %c0_2] : memref<1x8x128xf32, #tpu.memory_space<vmem>>, vector<1x8x128xf32>
    %4 = vector.shape_cast %3 : vector<1x8x128xf32> to vector<8x128xf32>
    %c0_3 = arith.constant 0 : index
    %c0_4 = arith.constant 0 : index
    %5 = vector.load %arg9[%c0_3, %c0_4] : memref<8x256xf32, #tpu.memory_space<vmem>>, vector<8x128xf32>
    tpu.vector_store %arg9[%c0_3, %c0_4], %4 {strides = array<i32>} : memref<8x256xf32, #tpu.memory_space<vmem>>, vector<8x128xf32>,
    %c0_5 = arith.constant 0 : index
    %c128 = arith.constant 128 : index
    %6 = vector.load %arg9[%c0_5, %c128] : memref<8x256xf32, #tpu.memory_space<vmem>>, vector<8x128xf32>
    %c0_6 = arith.constant 0 : index
    %c0_7 = arith.constant 0 : index
    %7 = vector.load %arg9[%c0_6, %c0_7] : memref<8x256xf32, #tpu.memory_space<vmem>>, vector<8x256xf32>
    %8 = arith.truncf %7 : vector<8x256xf32> to vector<8x256xbf16>
    %c0_8 = arith.constant 0 : index
    %c0_9 = arith.constant 0 : index
    %9 = vector.load %arg3[%c0_8, %c0_9] : memref<256x512xbf16, #tpu.memory_space<vmem>>, vector<256x512xbf16>
    %cst = arith.constant dense<0.000000e+00> : vector<8x512xf32>
    %10 = tpu.matmul %8, %9, %cst {dimension_numbers = #tpu.dot_dimension_numbers<[1], [0], [0], [1], [0, 0, 1, 1], [], []>} : vector<8x256xbf16>, vector<256x512xbf16>, vector<8x512xf32> -> vector<8x512xf32>
    %c0_10 = arith.constant 0 : index
    %c0_11 = arith.constant 0 : index
    %11 = vector.load %arg4[%c0_10, %c0_11] : memref<1x512xf32, #tpu.memory_space<vmem>>, vector<1x512xf32>
    %12 = vector.broadcast %11 : vector<1x512xf32> to vector<8x512xf32>
    %13 = arith.addf %10, %12 : vector<8x512xf32>
    %14 = vector.extract_strided_slice %13 {offsets = [0, 0], sizes = [8, 128], strides = [1, 1]} : vector<8x512xf32> to vector<8x128xf32>
    %15 = arith.negf %14 : vector<8x128xf32>
    %16 = math.exp %15 : vector<8x128xf32>
    %cst_12 = arith.constant 1.000000e+00 : f32
    %17 = vector.broadcast %cst_12 : f32 to vector<8x128xf32>
    %18 = arith.addf %17, %16 : vector<8x128xf32>
    %19 = arith.divf %17, %18 : vector<8x128xf32>
    %20 = vector.extract_strided_slice %13 {offsets = [0, 128], sizes = [8, 128], strides = [1, 1]} : vector<8x512xf32> to vector<8x128xf32>
    %21 = arith.negf %20 : vector<8x128xf32>
    %22 = math.exp %21 : vector<8x128xf32>
    %cst_13 = arith.constant 1.000000e+00 : f32
    %23 = vector.broadcast %cst_13 : f32 to vector<8x128xf32>
    %24 = arith.addf %23, %22 : vector<8x128xf32>
    %25 = arith.divf %23, %24 : vector<8x128xf32>
    %26 = vector.extract_strided_slice %13 {offsets = [0, 256], sizes = [8, 128], strides = [1, 1]} : vector<8x512xf32> to vector<8x128xf32>
    %27 = vector.extract_strided_slice %13 {offsets = [0, 384], sizes = [8, 128], strides = [1, 1]} : vector<8x512xf32> to vector<8x128xf32>
    %28 = arith.mulf %19, %27 : vector<8x128xf32>
    %29 = arith.addf %26, %28 : vector<8x128xf32>
    %30 = math.tanh %29 : vector<8x128xf32>
    %cst_14 = arith.constant 1.000000e+00 : f32
    %31 = vector.broadcast %cst_14 : f32 to vector<8x128xf32>
    %32 = arith.subf %31, %25 : vector<8x128xf32>
    %33 = arith.mulf %32, %30 : vector<8x128xf32>
    %34 = arith.mulf %25, %6 : vector<8x128xf32>
    %35 = arith.addf %33, %34 : vector<8x128xf32>
    %36 = arith.truncf %35 : vector<8x128xf32> to vector<8x128xbf16>
    %c0_15 = arith.constant 0 : index
    %c0_16 = arith.constant 0 : index
    %37 = vector.load %arg5[%c0_15, %c0_16] : memref<128x128xbf16, #tpu.memory_space<vmem>>, vector<128x128xbf16>
    %cst_17 = arith.constant dense<0.000000e+00> : vector<8x128xf32>
    %38 = tpu.matmul %36, %37, %cst_17 {dimension_numbers = #tpu.dot_dimension_numbers<[1], [0], [0], [1], [0, 0, 1, 1], [], []>} : vector<8x128xbf16>, vector<128x128xbf16>, vector<8x128xf32> -> vector<8x128xf32>
    %c0_18 = arith.constant 0 : index
    %c0_19 = arith.constant 0 : index
    %39 = vector.load %arg6[%c0_18, %c0_19] : memref<1x128xf32, #tpu.memory_space<vmem>>, vector<1x128xf32>
    %40 = vector.broadcast %39 : vector<1x128xf32> to vector<8x128xf32>
    %41 = arith.addf %38, %40 : vector<8x128xf32>
    %c0_20 = arith.constant 0 : index
    %c0_21 = arith.constant 0 : index
    %c0_22 = arith.constant 0 : index
    %42 = vector.load %arg7[%c0_20, %c0_21, %c0_22] : memref<1x8x128xf32, #tpu.memory_space<vmem>>, vector<1x8x128xf32>
    %43 = vector.shape_cast %42 : vector<1x8x128xf32> to vector<8x128xf32>
    %44 = vector.shape_cast %41 : vector<8x128xf32> to vector<1x8x128xf32>
    tpu.vector_store %arg7[%c0_20, %c0_21, %c0_22], %44 {strides = array<i32>} : memref<1x8x128xf32, #tpu.memory_space<vmem>>, vector<1x8x128xf32>,
    %c0_23 = arith.constant 0 : index
    %c128_24 = arith.constant 128 : index
    %45 = vector.load %arg9[%c0_23, %c128_24] : memref<8x256xf32, #tpu.memory_space<vmem>>, vector<8x128xf32>
    tpu.vector_store %arg9[%c0_23, %c128_24], %35 {strides = array<i32>} : memref<8x256xf32, #tpu.memory_space<vmem>>, vector<8x128xf32>,
    %c0_i32_25 = arith.constant 0 : i32
    %46 = arith.cmpi eq, %arg0, %c0_i32_25 : i32
    %47 = arith.extui %46 : i1 to i32
    %c0_i32_26 = arith.constant 0 : i32
    %48 = arith.cmpi ne, %47, %c0_i32_26 : i32
    scf.if %48 {
      %c0_27 = arith.constant 0 : index
      %c0_28 = arith.constant 0 : index
      %49 = vector.load %arg8[%c0_27, %c0_28] : memref<8x128xf32, #tpu.memory_space<vmem>>, vector<8x128xf32>
      tpu.vector_store %arg8[%c0_27, %c0_28], %35 {strides = array<i32>} : memref<8x128xf32, #tpu.memory_space<vmem>>, vector<8x128xf32>,
    } else {
    }
    return
  }
  func.func @transform_0(%arg0: i32) -> (i32, i32, i32) {
    %c0_i32 = arith.constant 0 : i32
    %c0_i32_0 = arith.constant 0 : i32
    %c0_i32_1 = arith.constant 0 : i32
    return %arg0, %c0_i32, %c0_i32_0 : i32, i32, i32
  }
  func.func @transform_1(%arg0: i32) -> (i32, i32) {
    %c0_i32 = arith.constant 0 : i32
    %c0_i32_0 = arith.constant 0 : i32
    %c0_i32_1 = arith.constant 0 : i32
    return %c0_i32, %c0_i32_0 : i32, i32
  }
  func.func @transform_2(%arg0: i32) -> (i32, i32) {
    %c0_i32 = arith.constant 0 : i32
    %c0_i32_0 = arith.constant 0 : i32
    %c0_i32_1 = arith.constant 0 : i32
    return %c0_i32, %c0_i32_0 : i32, i32
  }
  func.func @transform_3(%arg0: i32) -> (i32, i32) {
    %c0_i32 = arith.constant 0 : i32
    %c0_i32_0 = arith.constant 0 : i32
    %c0_i32_1 = arith.constant 0 : i32
    return %c0_i32, %c0_i32_0 : i32, i32
  }
  func.func @transform_4(%arg0: i32) -> (i32, i32) {
    %c0_i32 = arith.constant 0 : i32
    %c0_i32_0 = arith.constant 0 : i32
    %c0_i32_1 = arith.constant 0 : i32
    return %c0_i32, %c0_i32_0 : i32, i32
  }
  func.func @transform_5(%arg0: i32) -> (i32, i32) {
    %c0_i32 = arith.constant 0 : i32
    %c0_i32_0 = arith.constant 0 : i32
    %c0_i32_1 = arith.constant 0 : i32
    return %c0_i32, %c0_i32_0 : i32, i32
  }
  func.func @transform_6(%arg0: i32) -> (i32, i32, i32) {
    %c0_i32 = arith.constant 0 : i32
    %c0_i32_0 = arith.constant 0 : i32
    %c0_i32_1 = arith.constant 0 : i32
    return %arg0, %c0_i32, %c0_i32_0 : i32, i32, i32
  }
  func.func @transform_7(%arg0: i32) -> (i32, i32) {
    %c0_i32 = arith.constant 0 : i32
    %c0_i32_0 = arith.constant 0 : i32
    %c0_i32_1 = arith.constant 0 : i32
    return %c0_i32, %c0_i32_0 : i32, i32
  }
}

</mosaic_0001>

<bundles_post_ra>
// kernel: decoder_forward.1
= control target key start
LH: loop header
LB: loop body
LE: loop exit
PB: predicated region body
PF: predicated region fallthrough
CT: control target
= control target key end

     0   :  { %13 = vsyncpa [#allocation4], 0  ;;  %s1116_s0 = inlined_call_operand.vmem [shape: f32[1,8,128], index: 0, kind: input, shape index: {}]   ;;  %s1117_s1 = inlined_call_operand.vmem [shape: f32[8,128], index: 1, kind: input, shape index: {}]   ;;  %s1118_s2 = inlined_call_operand.hbm [shape: bf16[256,512], index: 2, kind: input, shape index: {}]   ;;  %s1119_s3 = inlined_call_operand.vmem [shape: f32[1,512], index: 3, kind: input, shape index: {}]   ;;  %s1120_s4 = inlined_call_operand.hbm [shape: bf16[128,128], index: 4, kind: input, shape index: {}]   ;;  %s1121_s5 = inlined_call_operand.vmem [shape: f32[1,128], index: 5, kind: input, shape index: {}]   ;;  %s1122_s6 = inlined_call_operand.hbm [shape: f32[1,8,128], index: 6, kind: output, shape index: {0}]   ;;  %s1123_s7 = inlined_call_operand.vmem [shape: f32[8,128], index: 7, kind: output, shape index: {1}]  }
   0x1   :  { %14 = vsyncpa [#allocation7], 0 }
   0x2   :  { %15 = vsyncpa [#allocation5], 0  ;;  %s1011_s24 = smov [#allocation3]   ;;  %s939_s28 = scalar_lea.hbm %s1118_s2, 8192 }
   0x3   :  { %s25_s25 = sshll.u32 %s1011_s24, 4  ;;  %p940_p0 = scmp.ne.s32.totalorder %s1118_s2, %s939_s28  ;;  %s26_s25 = int_to_ptr.vmem [resolvable:$true] %s25_s25 }
   0x4   :  { %p943_p1 = scmp.lt.u32.totalorder %s939_s28, %s1118_s2 }
   0x6   :  { %p945_p2 = pnand %p943_p1, %p940_p0 }
   0x8   :  { %948 = shalt.err (!%p945_p2)
}
   0x9   :  { %s949_s10 = scalar_lea.vmem %s26_s25, 8192  ;;  %p954_p4 = scmp.lt.s32.totalorder %s26_s25, %s26_s25 }
   0xa   :  { %p950_p3 = scmp.ne.s32.totalorder %s26_s25, %s949_s10  ;;  %p955_p5 = scmp.lt.s32.totalorder %s949_s10, %s949_s10 }
   0xc   :  { %p956_p6 = por %p955_p5, %p954_p4 }
   0xe   :  { %p957_p7 = pnand %p956_p6, %p950_p3 }
  0x10   :  { %960 = shalt.err (!%p957_p7)
}
  0x11   :  { %s1012_s11 = smov 256   ;;  %s1013_s12 = smov 16  }
  0x12   :  { %31 = dma.hbm_to_vmem [thread:$0]  %s1118_s2, 8192, %s26_s25, [#allocation4], %s1012_s11, %s1012_s11, %s1013_s12  }
  0x13   :  { %s1014_s15 = smov [#allocation6]   ;;  %s961_s19 = scalar_lea.hbm %s1120_s4, 1024 }
  0x14   :  { %s39_s16 = sshll.u32 %s1014_s15, 4  ;;  %p962_p8 = scmp.ne.s32.totalorder %s1120_s4, %s961_s19  ;;  %s40_s16 = int_to_ptr.vmem [resolvable:$true] %s39_s16 }
  0x15   :  { %p965_p9 = scmp.lt.u32.totalorder %s961_s19, %s1120_s4 }
  0x17   :  { %p967_p10 = pnand %p965_p9, %p962_p8 }
  0x19   :  { %970 = shalt.err (!%p967_p10)
}
  0x1a   :  { %s971_s24 = scalar_lea.vmem %s40_s16, 1024  ;;  %p976_p12 = scmp.lt.s32.totalorder %s40_s16, %s40_s16 }
  0x1b   :  { %p972_p11 = scmp.ne.s32.totalorder %s40_s16, %s971_s24  ;;  %p977_p13 = scmp.lt.s32.totalorder %s971_s24, %s971_s24 }
  0x1d   :  { %p978_p0 = por %p977_p13, %p976_p12 }
  0x1f   :  { %p979_p1 = pnand %p978_p0, %p972_p11 }
  0x21   :  { %982 = shalt.err (!%p979_p1)
}
  0x22   :  { %s1015_s2 = smov 64   ;;  %s1016_s25 = smov 4  }
  0x23   :  { %45 = dma.hbm_to_vmem [thread:$0]  %s1120_s4, 1024, %s40_s16, [#allocation7], %s1015_s2, %s1015_s2, %s1016_s25  }
  0x24   :  { %1005 = dma.done.wait [#allocation4], 8192  }
  0x25   :  { %1006 = vsyncadd [#allocation4], 4294959104 }
  0x26   :  { %1007 = dma.done.wait [#allocation7], 1024  }
  0x27   :  { %1008 = vsyncadd [#allocation7], 4294966272  ;;  %v825_v0 = vld [vmem:[#allocation3 + $0x4] ss:$16 sps:$4 sm:$0xff]   ;;  %v827_v1 = vld [vmem:[#allocation3] ss:$16 sps:$4 sm:$0xff]  }
  0x28   :  { %473 = vmatprep.subr.bf16.mxu0 %v825_v0  ;;  %v828_v2 = vld [vmem:[#allocation3 + $0x24] ss:$16 sps:$4 sm:$0xff]   ;;  %v830_v3 = vld [vmem:[#allocation3 + $0x20] ss:$16 sps:$4 sm:$0xff]   ;;  %v843_v7 = vld [vmem:[#allocation3 + $0xc] ss:$16 sps:$4 sm:$0xff]  }
  0x29   :  { %474 = vmatpush1.bf16.msra.mxu0 %v827_v1  ;;  %v831_v4 = vld [vmem:[#allocation3 + $0x44] ss:$16 sps:$4 sm:$0xff]   ;;  %v833_v5 = vld [vmem:[#allocation3 + $0x40] ss:$16 sps:$4 sm:$0xff]   ;;  %v845_v8 = vld [vmem:[#allocation3 + $0x8] ss:$16 sps:$4 sm:$0xff]   ;;  %514 = vmatprep.subr.bf16.mxu1 %v843_v7 }
  0x2a   :  { %475 = vmatprep.subr.bf16.mxu0 %v828_v2  ;;  %v834_v6 = vld [vmem:[#allocation3 + $0x64] ss:$16 sps:$4 sm:$0xff]   ;;  %v836_v9 = vld [vmem:[#allocation3 + $0x60] ss:$16 sps:$4 sm:$0xff]   ;;  %515 = vmatpush1.bf16.msra.mxu1 %v845_v8  ;;  %v849_v10 = vld [vmem:[#allocation3 + $0x2c] ss:$16 sps:$4 sm:$0xff]  }
  0x2b   :  { %v851_v11 = vld [vmem:[#allocation3 + $0x28] ss:$16 sps:$4 sm:$0xff]   ;;  %v837_v12 = vld [vmem:[#allocation3 + $0x84] ss:$16 sps:$4 sm:$0xff]   ;;  %516 = vmatprep.subr.bf16.mxu1 %v849_v10  ;;  %v839_v13 = vld [vmem:[#allocation3 + $0x80] ss:$16 sps:$4 sm:$0xff]  }
  0x2c   :  { %v855_v14 = vld [vmem:[#allocation3 + $0x4c] ss:$16 sps:$4 sm:$0xff]   ;;  %v840_v15 = vld [vmem:[#allocation3 + $0xa4] ss:$16 sps:$4 sm:$0xff]   ;;  %v857_v16 = vld [vmem:[#allocation3 + $0x48] ss:$16 sps:$4 sm:$0xff]  }
  0x2d   :  { %476 = vmatpush1.bf16.msra.mxu0 %v830_v3  ;;  %v861_v17 = vld [vmem:[#allocation3 + $0x6c] ss:$16 sps:$4 sm:$0xff]   ;;  %v842_v18 = vld [vmem:[#allocation3 + $0xa0] ss:$16 sps:$4 sm:$0xff]   ;;  %v846_v19 = vld [vmem:[#allocation3 + $0xc4] ss:$16 sps:$4 sm:$0xff]  }
  0x2e   :  { %477 = vmatprep.subr.bf16.mxu0 %v831_v4  ;;  %517 = vmatpush1.bf16.msra.mxu1 %v851_v11  ;;  %v863_v20 = vld [vmem:[#allocation3 + $0x68] ss:$16 sps:$4 sm:$0xff]   ;;  %v867_v21 = vld [vmem:[#allocation3 + $0x8c] ss:$16 sps:$4 sm:$0xff]   ;;  %v848_v22 = vld [vmem:[#allocation3 + $0xc0] ss:$16 sps:$4 sm:$0xff]  }
  0x2f   :  { %518 = vmatprep.subr.bf16.mxu1 %v855_v14  ;;  %v852_v23 = vld [vmem:[#allocation3 + $0xe4] ss:$16 sps:$4 sm:$0xff]   ;;  %v869_v24 = vld [vmem:[#allocation3 + $0x88] ss:$16 sps:$4 sm:$0xff]   ;;  %v873_v25 = vld [vmem:[#allocation3 + $0xac] ss:$16 sps:$4 sm:$0xff]  }
  0x30   :  { %v854_v26 = vld [vmem:[#allocation3 + $0xe0] ss:$16 sps:$4 sm:$0xff]   ;;  %v858_v27 = vld [vmem:[#allocation3 + $0x104] ss:$16 sps:$4 sm:$0xff]   ;;  %v875_v28 = vld [vmem:[#allocation3 + $0xa8] ss:$16 sps:$4 sm:$0xff]  }
  0x31   :  { %478 = vmatpush1.bf16.msra.mxu0 %v833_v5  ;;  %v879_v29 = vld [vmem:[#allocation3 + $0xcc] ss:$16 sps:$4 sm:$0xff]   ;;  %v860_v30 = vld [vmem:[#allocation3 + $0x100] ss:$16 sps:$4 sm:$0xff]   ;;  %v864_v31 = vld [vmem:[#allocation3 + $0x124] ss:$16 sps:$4 sm:$0xff]  }
  0x32   :  { %479 = vmatprep.subr.bf16.mxu0 %v834_v6  ;;  %519 = vmatpush1.bf16.msra.mxu1 %v857_v16  ;;  %v881_v32 = vld [vmem:[#allocation3 + $0xc8] ss:$16 sps:$4 sm:$0xff]   ;;  %v885_v33 = vld [vmem:[#allocation3 + $0xec] ss:$16 sps:$4 sm:$0xff]   ;;  %v866_v34 = vld [vmem:[#allocation3 + $0x120] ss:$16 sps:$4 sm:$0xff]  }
  0x33   :  { %520 = vmatprep.subr.bf16.mxu1 %v861_v17  ;;  %v887_v35 = vld [vmem:[#allocation3 + $0xe8] ss:$16 sps:$4 sm:$0xff]   ;;  %v1087_v36 = vld [vmem:[%s1117_s1] sm:$0xff]  ;;  %v891_v38 = vld [vmem:[#allocation3 + $0x10c] ss:$16 sps:$4 sm:$0xff]   ;;  %v1017_v5 = vmov 0.0  }
  0x34   :  { %v870_v37 = vld [vmem:[#allocation3 + $0x144] ss:$16 sps:$4 sm:$0xff]   ;;  %v66_v39 = vpack.c.bf16 %v1087_v36, %v1087_v36  ;;  %v872_v40 = vld [vmem:[#allocation3 + $0x140] ss:$16 sps:$4 sm:$0xff]   ;;  %v893_v41 = vld [vmem:[#allocation3 + $0x108] ss:$16 sps:$4 sm:$0xff]  }
  0x35   :  { %480 = vmatpush1.bf16.msra.mxu0 %v836_v9  ;;  %v876_v42 = vld [vmem:[#allocation3 + $0x164] ss:$16 sps:$4 sm:$0xff]   ;;  %v897_v43 = vld [vmem:[#allocation3 + $0x12c] ss:$16 sps:$4 sm:$0xff]   ;;  %v878_v44 = vld [vmem:[#allocation3 + $0x160] ss:$16 sps:$4 sm:$0xff]  }
  0x36   :  { %481 = vmatprep.subr.bf16.mxu0 %v837_v12  ;;  %521 = vmatpush1.bf16.msra.mxu1 %v863_v20  ;;  %v882_v45 = vld [vmem:[#allocation3 + $0x184] ss:$16 sps:$4 sm:$0xff]   ;;  %v899_v46 = vld [vmem:[#allocation3 + $0x128] ss:$16 sps:$4 sm:$0xff]   ;;  %v903_v47 = vld [vmem:[#allocation3 + $0x14c] ss:$16 sps:$4 sm:$0xff]  }
  0x37   :  { %522 = vmatprep.subr.bf16.mxu1 %v867_v21  ;;  %505 = vmatprep.mubr.bf16.mxu0 %v66_v39  ;;  %v884_v48 = vld [vmem:[#allocation3 + $0x180] ss:$16 sps:$4 sm:$0xff]   ;;  %v905_v49 = vld [vmem:[#allocation3 + $0x148] ss:$16 sps:$4 sm:$0xff]   ;;  %v888_v50 = vld [vmem:[#allocation3 + $0x1a4] ss:$16 sps:$4 sm:$0xff]  }
  0x38   :  { %546 = vmatprep.mubr.bf16.mxu1 %v66_v39  ;;  %v906_v51 = vld [vmem:[#allocation3 + $0x16c] ss:$16 sps:$4 sm:$0xff]   ;;  %v890_v52 = vld [vmem:[#allocation3 + $0x1a0] ss:$16 sps:$4 sm:$0xff]   ;;  %v908_v53 = vld [vmem:[#allocation3 + $0x168] ss:$16 sps:$4 sm:$0xff]  }
  0x39   :  { %482 = vmatpush1.bf16.msra.mxu0 %v839_v13  ;;  %v894_v54 = vld [vmem:[#allocation3 + $0x1c4] ss:$16 sps:$4 sm:$0xff]   ;;  %v909_v55 = vld [vmem:[#allocation3 + $0x18c] ss:$16 sps:$4 sm:$0xff]   ;;  %v896_v56 = vld [vmem:[#allocation3 + $0x1c0] ss:$16 sps:$4 sm:$0xff]   ;;  %v133_v13 = vlaneseq }
  0x3a   :  { %483 = vmatprep.subr.bf16.mxu0 %v840_v15  ;;  %523 = vmatpush1.bf16.msra.mxu1 %v869_v24  ;;  %v911_v57 = vld [vmem:[#allocation3 + $0x188] ss:$16 sps:$4 sm:$0xff]   ;;  %v900_v58 = vld [vmem:[#allocation3 + $0x1e4] ss:$16 sps:$4 sm:$0xff]   ;;  %v912_v59 = vld [vmem:[#allocation3 + $0x1ac] ss:$16 sps:$4 sm:$0xff]  }
  0x3b   :  { %524 = vmatprep.subr.bf16.mxu1 %v873_v25  ;;  %v902_v60 = vld [vmem:[#allocation3 + $0x1e0] ss:$16 sps:$4 sm:$0xff]   ;;  %v914_v62 = vld [vmem:[#allocation3 + $0x1a8] ss:$16 sps:$4 sm:$0xff]   ;;  %v915_v63 = vld [vmem:[#allocation3 + $0x1cc] ss:$16 sps:$4 sm:$0xff]  }
  0x3c   :  { %v61_v61 = vld [vmem:[%s1116_s0] sm:$0xff]  ;;  %v917_v1 = vld [vmem:[#allocation3 + $0x1c8] ss:$16 sps:$4 sm:$0xff]   ;;  %v918_v2 = vld [vmem:[#allocation3 + $0x1ec] ss:$16 sps:$4 sm:$0xff]   ;;  %vm1018_vm0 = vmmov 0  }
  0x3d   :  { %484 = vmatpush1.bf16.msra.mxu0 %v842_v18  ;;  %v65_v0 = vpack.c.bf16 %v61_v61, %v61_v61  ;;  %v920_v3 = vld [vmem:[#allocation3 + $0x1e8] ss:$16 sps:$4 sm:$0xff]   ;;  %v921_v4 = vld [vmem:[#allocation6] sm:$0xff]   ;;  %v923_v7 = vld [vmem:[#allocation6 + $0x10] sm:$0xff]   ;;  %v134_v14 = vshrl.u32 %v133_v13, 7  ;;  %s1019_s11 = smov [#allocation8]  }
  0x3e   :  { %485 = vmatprep.subr.bf16.mxu0 %v846_v19  ;;  %525 = vmatpush1.bf16.msra.mxu1 %v875_v28  ;;  %v922_v6 = vld [vmem:[#allocation6 + $0x8] sm:$0xff]   ;;  %v924_v8 = vld [vmem:[#allocation6 + $0x18] sm:$0xff]   ;;  %v925_v9 = vld [vmem:[#allocation6 + $0x20] sm:$0xff]   ;;  %s698_s12 = sshll.u32 %s1019_s11, 4  ;;  %s699_s12 = int_to_ptr.vmem [resolvable:$true] %s698_s12 }
  0x3f   :  { %526 = vmatprep.subr.bf16.mxu1 %v879_v29  ;;  %v926_v10 = vld [vmem:[#allocation6 + $0x28] sm:$0xff]   ;;  %v927_v11 = vld [vmem:[#allocation6 + $0x30] sm:$0xff]   ;;  %v928_v12 = vld [vmem:[#allocation6 + $0x38] sm:$0xff]   ;;  %v135_v15 = vsub.s32 0, %v134_v14  ;;  %v139_v17 = vsub.s32 1, %v134_v14  ;;  %s983_s13 = scalar_lea.vmem %s699_s12, 128  ;;  %p988_p3 = scmp.lt.s32.totalorder %s699_s12, %s699_s12 }
  0x40   :  { %v131_v16 = vld [vmem:[%s1119_s3] sm:$0xf]  ;;  %p984_p2 = scmp.ne.s32.totalorder %s699_s12, %s983_s13  ;;  %p989_p4 = scmp.lt.s32.totalorder %s983_s13, %s983_s13 }
  0x41   :  { %486 = vmatpush1.bf16.msra.mxu0 %v848_v22  ;;  %v136_v18 = vrot.slane %v131_v16, %v135_v15  ;;  %v140_v20 = vrot.slane %v131_v16, %v139_v17 }
  0x42   :  { %487 = vmatprep.subr.bf16.mxu0 %v852_v23  ;;  %527 = vmatpush1.bf16.msra.mxu1 %v881_v32  ;;  %p990_p5 = por %p989_p4, %p988_p3 }
  0x43   :  { %528 = vmatprep.subr.bf16.mxu1 %v885_v33 }
  0x44   :  { %p991_p6 = pnand %p990_p5, %p984_p2 }
  0x45   :  { %488 = vmatpush1.bf16.msra.mxu0 %v854_v26 }
  0x46   :  { %489 = vmatprep.subr.bf16.mxu0 %v858_v27  ;;  %529 = vmatpush1.bf16.msra.mxu1 %v887_v35  ;;  %v143_v35 = vsub.s32 2, %v134_v14 }
  0x47   :  { %530 = vmatprep.subr.bf16.mxu1 %v891_v38 }
  0x49   :  { %490 = vmatpush1.bf16.msra.mxu0 %v860_v30 }
  0x4a   :  { %491 = vmatprep.subr.bf16.mxu0 %v864_v31  ;;  %531 = vmatpush1.bf16.msra.mxu1 %v893_v41 }
  0x4b   :  { %532 = vmatprep.subr.bf16.mxu1 %v897_v43 }
  0x4d   :  { %492 = vmatpush1.bf16.msra.mxu0 %v866_v34  ;;  %v147_v34 = vsub.s32 3, %v134_v14 }
  0x4e   :  { %493 = vmatprep.subr.bf16.mxu0 %v870_v37  ;;  %533 = vmatpush1.bf16.msra.mxu1 %v899_v46 }
  0x4f   :  { %534 = vmatprep.subr.bf16.mxu1 %v903_v47  ;;  %v148_v37 = vrot.slane %v131_v16, %v147_v34 }
  0x51   :  { %494 = vmatpush1.bf16.msra.mxu0 %v872_v40  ;;  %v144_v40 = vrot.slane %v131_v16, %v143_v35 }
  0x52   :  { %495 = vmatprep.subr.bf16.mxu0 %v876_v42  ;;  %535 = vmatpush1.bf16.msra.mxu1 %v905_v49 }
  0x53   :  { %536 = vmatprep.subr.bf16.mxu1 %v906_v51 }
  0x55   :  { %496 = vmatpush1.bf16.msra.mxu0 %v878_v44 }
  0x56   :  { %497 = vmatprep.subr.bf16.mxu0 %v882_v45  ;;  %537 = vmatpush1.bf16.msra.mxu1 %v908_v53  ;;  %v778_v53 = vld [vmem:[%s1121_s5] ss:$0 sm:$0xff] }
  0x57   :  { %538 = vmatprep.subr.bf16.mxu1 %v909_v55 }
  0x59   :  { %498 = vmatpush1.bf16.msra.mxu0 %v884_v48 }
  0x5a   :  { %499 = vmatprep.subr.bf16.mxu0 %v888_v50  ;;  %539 = vmatpush1.bf16.msra.mxu1 %v911_v57 }
  0x5b   :  { %540 = vmatprep.subr.bf16.mxu1 %v912_v59 }
  0x5d   :  { %500 = vmatpush1.bf16.msra.mxu0 %v890_v52 }
  0x5e   :  { %501 = vmatprep.subr.bf16.mxu0 %v894_v54  ;;  %541 = vmatpush1.bf16.msra.mxu1 %v914_v62 }
  0x5f   :  { %542 = vmatprep.subr.bf16.mxu1 %v915_v63 }
  0x61   :  { %502 = vmatpush1.bf16.msra.mxu0 %v896_v56 }
  0x62   :  { %503 = vmatprep.subr.bf16.mxu0 %v900_v58  ;;  %543 = vmatpush1.bf16.msra.mxu1 %v917_v1 }
  0x63   :  { %544 = vmatprep.subr.bf16.mxu1 %v918_v2 }
  0x65   :  { %504 = vmatpush1.bf16.msra.mxu0 %v902_v60 }
  0x66   :  { %545 = vmatpush1.bf16.msra.mxu1 %v920_v3  ;;  %796 = vmatprep.subr.bf16.mxu0 %v1017_v5 }
  0x68   :  { %506 = vmatmul.mubr.bf16.vlgmr.msra.gmra.mrb[0].mxu0 %v65_v0 }
  0x69   :  { %547 = vmatmul.mubr.bf16.vlgmr.msra.gmra.mrb[0].mxu1 %v65_v0  ;;  %797 = vmatpush3.bf16.msra.mxu0 %v921_v4 }
  0x6a   :  { %798 = vmatprep.subr.bf16.mxu0 %v1017_v5  ;;  %812 = vmatprep.mubr.msk.bf16.mxu0 %vm1018_vm0, %v1017_v5 }
  0x6d   :  { %799 = vmatpush3.bf16.msra.mxu0 %v922_v6 }
  0x6e   :  { %800 = vmatprep.subr.bf16.mxu0 %v1017_v5 }
  0x71   :  { %801 = vmatpush3.bf16.msra.mxu0 %v923_v7 }
  0x72   :  { %802 = vmatprep.subr.bf16.mxu0 %v1017_v5 }
  0x75   :  { %803 = vmatpush3.bf16.msra.mxu0 %v924_v8 }
  0x76   :  { %804 = vmatprep.subr.bf16.mxu0 %v1017_v5 }
  0x79   :  { %805 = vmatpush3.bf16.msra.mxu0 %v925_v9 }
  0x7a   :  { %806 = vmatprep.subr.bf16.mxu0 %v1017_v5 }
  0x7d   :  { %807 = vmatpush3.bf16.msra.mxu0 %v926_v10 }
  0x7e   :  { %808 = vmatprep.subr.bf16.mxu0 %v1017_v5 }
  0x81   :  { %809 = vmatpush3.bf16.msra.mxu0 %v927_v11 }
  0x82   :  { %810 = vmatprep.subr.bf16.mxu0 %v1017_v5 }
  0x85   :  { %811 = vmatpush3.bf16.msra.mxu0 %v928_v12 }
 0x13b   :  { %v507_v19 = vpop.f32.mrb[0].mxu0 }
 0x13c   :  { %v508_v21 = vadd.f32 %v507_v19, %v136_v18  ;;  %v509_v22 = vpop.f32.mrb[1].mxu0  ;;  %v548_v28 = vpop.f32.mrb[0].mxu1 }
 0x13d   :  { %v511_v23 = vpop.f32.mrb[2].mxu0  ;;  %v510_v26 = vadd.f32 %v509_v22, %v140_v20  ;;  %v550_v29 = vpop.f32.mrb[1].mxu1  ;;  %v549_v43 = vadd.f32 %v548_v28, %v144_v40 }
 0x13e   :  { %v776_v24 = vmul.f32 -1.442695, %v508_v21  ;;  %v512_v25 = vpop.f32.mrb[3].mxu0  ;;  %v552_v30 = vpop.f32.mrb[2].mxu1  ;;  %v551_v41 = vadd.f32 %v550_v29, %v148_v37 }
 0x13f   :  { %v777_v27 = vmul.f32 -1.442695, %v510_v26  ;;  %v553_v31 = vpop.f32.mrb[3].mxu1 }
 0x140   :  { %929 = vpow2.f32 %v776_v24 }
 0x141   :  { %931 = vpow2.f32 %v777_v27 }
 0x14a   :  { %v930_v32 = vpop.eup %929 }
 0x14b   :  { %v558_v33 = vadd.f32 1.0, %v930_v32  ;;  %v932_v38 = vpop.eup %931 }
 0x14c   :  { %v564_v39 = vadd.f32 1.0, %v932_v38 }
 0x14d   :  { %933 = vrcp.f32 %v558_v33 }
 0x14e   :  { %935 = vrcp.f32 %v564_v39 }
 0x157   :  { %v934_v42 = vpop.eup %933 }
 0x158   :  { %v567_v44 = vmul.f32 %v934_v42, %v551_v41  ;;  %v936_v46 = vpop.eup %935 }
 0x159   :  { %v570_v47 = vsub.f32 1.0, %v936_v46  ;;  %v572_v50 = vmul.f32 %v936_v46, %v1087_v36 }
 0x15a   :  { %v568_v45 = vadd.f32 %v567_v44, %v549_v43 }
 0x15c   :  { %937 = vtanh.f32 %v568_v45 }
 0x166   :  { %v938_v48 = vpop.eup %937 }
 0x167   :  { %v571_v49 = vmul.f32 %v938_v48, %v570_v47 }
 0x169   :  { %v573_v51 = vadd.f32 %v572_v50, %v571_v49 }
 0x16b   :  { %v574_v52 = vpack.c.bf16 %v573_v51, %v573_v51  ;;  %691 = vst [vmem:[%s1123_s7] sm:$0xff] %v573_v51 }
 0x16d   :  { %813 = vmatmul.mubr.bf16.vlgmr.msra.gmra.mrb[4].mxu0 %v574_v52 }
 0x240   :  { %v680_v54 = vpop.f32.mrb[4].mxu0 }
 0x241   :  { %v681_v55 = vadd.f32 %v778_v53, %v680_v54  ;;  %v814_v56 = vpop.f32.mrb[5].mxu0 }
 0x242   :  { %v683_v57 = vpop.f32.mrb[6].mxu0 }
 0x243   :  { %686 = vst [vmem:[#allocation8] sm:$0xff] %v681_v55  ;;  %v815_v36 = vpop.f32.mrb[7].mxu0 }
 0x244   :  { %994 = shalt.err (!%p991_p6)
}
 0x245   :  { %s995_s5 = scalar_lea.hbm %s1122_s6, 128 }
 0x246   :  { %p996_p7 = scmp.ne.s32.totalorder %s1122_s6, %s995_s5  ;;  %p999_p8 = scmp.lt.u32.totalorder %s995_s5, %s1122_s6 }
 0x248   :  { %p1001_p9 = pnand %p999_p8, %p996_p7 }
 0x24a   :  { %1004 = shalt.err (!%p1001_p9)
}
 0x24b   :  { %701 = dma.vmem_to_hbm [thread:$0]  %s699_s12, 128, %s1122_s6, [#allocation5]  }
 0x24c   :  { %1009 = dma.done.wait [#allocation5], 128  }
 0x24d   :  { %1010 = vsyncadd [#allocation5], 4294967168 }
 0x24e   :  { %709 = vsyncpa [#allocation4], 1 }
 0x24f   :  { %710 = vsyncpa [#allocation7], 1 }
 0x250   :  { %711 = vsyncpa [#allocation5], 1 }

</bundles_post_ra>
